<compile_context>
chip_gen: v7x
topology: tpu7x:2x2x1
jax: 0.10.0
libtpu: 0.0.40
codegen_flags: <defaults>
</compile_context>

<pallas_src>
import math

import jax
import jax.numpy as jnp
import numpy as np
from jax import lax
from jax.experimental import pallas as pl
from jax.experimental.pallas import tpu as pltpu

NEG_SLOPE = 0.2
BN_EPS = 1e-5


def _euler_kernel(xT_ref, w1t_ref, w2t_ref, w3_ref, vecs_ref, sc_ref, out_ref):
    # Shapes (features on sublanes, batch on lanes):
    #   xT_ref   : (C, N)
    #   w1t_ref  : (hidden, C)
    #   w2t_ref  : (hidden, hidden)
    #   w3_ref   : (hidden, 1)
    #   vecs_ref : (hidden, 6)  columns = [b1, g1, be1, b2, g2, be2]
    #   sc_ref   : (4,) in SMEM = [gamma, b3, g3, be3]
    #   out_ref  : (2, N)       rows = [cos(gamma*z), sin(gamma*z)]
    n = xT_ref.shape[1]
    inv_n = 1.0 / float(n)

    def leaky(h):
        # LeakyReLU(0.2) == max(h, 0.2*h) for slope in [0, 1]
        return jnp.maximum(h, NEG_SLOPE * h)

    def bn_rows_1pass(h, g, b):
        # Training-mode BN over the batch (lane) axis, biased variance,
        # single traversal: var = E[h^2] - mean^2 (clamped at 0).
        m = jnp.sum(h, axis=1, keepdims=True) * inv_n
        ms = jnp.sum(h * h, axis=1, keepdims=True) * inv_n
        v = jnp.maximum(ms - m * m, 0.0)
        return (h - m) * lax.rsqrt(v + BN_EPS) * g + b

    vecs = vecs_ref[...]                       # (hidden, 6), one vreg-row load
    b1, g1, be1 = vecs[:, 0:1], vecs[:, 1:2], vecs[:, 2:3]
    b2, g2, be2 = vecs[:, 3:4], vecs[:, 4:5], vecs[:, 5:6]

    gamma = sc_ref[0]
    b3 = sc_ref[1]
    g3 = sc_ref[2]
    be3 = sc_ref[3]

    xT = xT_ref[...]                           # (C, N)

    # --- mlp1, layer 1: Linear -> LeakyReLU -> BN -> Dropout(0) ---
    h = jnp.dot(w1t_ref[...], xT, preferred_element_type=jnp.float32) + b1
    h = bn_rows_1pass(leaky(h), g1, be1)       # (hidden, N)

    # --- mlp1, layer 2 ---
    h = jnp.dot(w2t_ref[...], h, preferred_element_type=jnp.float32) + b2
    h = bn_rows_1pass(leaky(h), g2, be2)       # (hidden, N)

    # --- Seq(Linear(hidden, 1), BatchNorm1d(1)) ---
    # hidden->1 projection as VPU mul + sublane (XLU) reduce: lane dim stays N.
    z = jnp.sum(w3_ref[...] * h, axis=0, keepdims=True) + b3      # (1, N)

    # two-pass BN for the scalar feature (variance can be near zero)
    m = jnp.sum(z, axis=1, keepdims=True) * inv_n
    v = jnp.sum((z - m) ** 2, axis=1, keepdims=True) * inv_n
    z = (z - m) * lax.rsqrt(v + BN_EPS) * g3 + be3                # (1, N)

    # --- cat([cos(gamma*z), sin(gamma*z)]) written as two lane-dense rows ---
    gz = gamma * z                                                # (1, N)
    out_ref[0:1, :] = jnp.cos(gz)
    out_ref[1:2, :] = jnp.sin(gz)


def euler_feat_extract(x, params):
    """x: (N, in_channels) float32 -> (N, 2) float32 (matches torch module)."""
    n = x.shape[0]
    hidden = params["w1"].shape[1]

    # Layout plumbing (done once per call in XLA, outside the kernel):
    # transpose so the batch lands on the lane axis, and pack the tiny
    # per-feature vectors / true scalars into two inputs.
    xT = x.T                                                   # (C, N)
    w1t = params["w1"].T                                       # (hidden, C)
    w2t = params["w2"].T                                       # (hidden, hidden)
    w3 = params["w3"].reshape(hidden, 1)                       # (hidden, 1)
    vecs = jnp.stack(
        [params["b1"], params["g1"], params["be1"],
         params["b2"], params["g2"], params["be2"]], axis=1)   # (hidden, 6)
    scalars = jnp.concatenate(
        [params["gamma"].reshape(1), params["b3"].reshape(1),
         params["g3"].reshape(1), params["be3"].reshape(1)]
    ).astype(jnp.float32)                                      # (4,)

    vmem = pl.BlockSpec(memory_space=pltpu.MemorySpace.VMEM)
    smem = pl.BlockSpec(memory_space=pltpu.MemorySpace.SMEM)

    out_t = pl.pallas_call(
        _euler_kernel,
        out_shape=jax.ShapeDtypeStruct((2, n), jnp.float32),
        in_specs=[vmem, vmem, vmem, vmem, vmem, smem],
        out_specs=vmem,
    )(xT, w1t, w2t, w3, vecs, scalars)

    return out_t.T                                             # (N, 2)


def init_params(key, in_channels, hidden):
    """Deterministic parameter init mirroring the torch module's shapes."""
    ks = jax.random.split(key, 6)

    def linear(kw, kb, fan_in, fan_out):
        bound = 1.0 / math.sqrt(fan_in)
        w = jax.random.uniform(kw, (fan_in, fan_out), jnp.float32, -bound, bound)
        b = jax.random.uniform(kb, (fan_out,), jnp.float32, -bound, bound)
        return w, b

    w1, b1 = linear(ks[0], ks[1], in_channels, hidden)
    w2, b2 = linear(ks[2], ks[3], hidden, hidden)
    w3, b3 = linear(ks[4], ks[5], hidden, 1)

    return dict(
        w1=w1, b1=b1,
        g1=jnp.ones((hidden,), jnp.float32), be1=jnp.zeros((hidden,), jnp.float32),
        w2=w2, b2=b2,
        g2=jnp.ones((hidden,), jnp.float32), be2=jnp.zeros((hidden,), jnp.float32),
        w3=w3, b3=b3,
        g3=jnp.ones((1,), jnp.float32), be3=jnp.zeros((1,), jnp.float32),
        gamma=jnp.array([math.pi / 2], dtype=jnp.float32),
    )


def ref_forward(x, p):
    """Pure-JAX reference (torch training-mode semantics, standard layout)."""
    def leaky(h):
        return jnp.where(h >= 0, h, NEG_SLOPE * h)

    def bn(h, g, b):
        m = jnp.mean(h, axis=0, keepdims=True)
        v = jnp.mean((h - m) ** 2, axis=0, keepdims=True)
        return (h - m) / jnp.sqrt(v + BN_EPS) * g + b

    h = bn(leaky(x @ p["w1"] + p["b1"]), p["g1"], p["be1"])
    h = bn(leaky(h @ p["w2"] + p["b2"]), p["g2"], p["be2"])
    z = bn(h @ p["w3"] + p["b3"], p["g3"], p["be3"])
    gz = p["gamma"][0] * z
    return jnp.concatenate([jnp.cos(gz), jnp.sin(gz)], axis=1)


if __name__ == "__main__":
    key = jax.random.PRNGKey(0)
    k_x, k_p = jax.random.split(key)

    # N = 128 keeps the batch small but exactly one lane-width -> full vregs.
    N, IN_CHANNELS, HIDDEN = 128, 4, 32
    x = jax.random.normal(k_x, (N, IN_CHANNELS), dtype=jnp.float32)
    params = init_params(k_p, IN_CHANNELS, HIDDEN)

    out = euler_feat_extract(x, params)
    out = jax.block_until_ready(out)

    expected = ref_forward(x, params)
    assert out.shape == (N, 2), out.shape
    np.testing.assert_allclose(np.asarray(out), np.asarray(expected),
                               rtol=1e-5, atol=1e-5)
    print("KERNEL_OK")
</pallas_src>

<mosaic_0001>
module attributes {stable_mosaic.version = 11 : i64} {
  func.func @_euler_kernel(%arg0: memref<4x128xf32, #tpu.memory_space<vmem>>, %arg1: memref<32x4xf32, #tpu.memory_space<vmem>>, %arg2: memref<32x32xf32, #tpu.memory_space<vmem>>, %arg3: memref<32x1xf32, #tpu.memory_space<vmem>>, %arg4: memref<32x6xf32, #tpu.memory_space<vmem>>, %arg5: memref<4xf32, #tpu.memory_space<smem>>, %arg6: memref<2x128xf32, #tpu.memory_space<vmem>>) attributes {dimension_semantics = [], scalar_prefetch = 0 : i64, scratch_operands = 0 : i64, tpu.core_type = #tpu.core_type<tc>} {
    %c0 = arith.constant 0 : index
    %c0_0 = arith.constant 0 : index
    %0 = vector.load %arg4[%c0, %c0_0] : memref<32x6xf32, #tpu.memory_space<vmem>>, vector<32x6xf32>
    %1 = vector.extract_strided_slice %0 {offsets = [0, 0], sizes = [32, 1], strides = [1, 1]} : vector<32x6xf32> to vector<32x1xf32>
    %2 = vector.extract_strided_slice %0 {offsets = [0, 1], sizes = [32, 1], strides = [1, 1]} : vector<32x6xf32> to vector<32x1xf32>
    %3 = vector.extract_strided_slice %0 {offsets = [0, 2], sizes = [32, 1], strides = [1, 1]} : vector<32x6xf32> to vector<32x1xf32>
    %4 = vector.extract_strided_slice %0 {offsets = [0, 3], sizes = [32, 1], strides = [1, 1]} : vector<32x6xf32> to vector<32x1xf32>
    %5 = vector.extract_strided_slice %0 {offsets = [0, 4], sizes = [32, 1], strides = [1, 1]} : vector<32x6xf32> to vector<32x1xf32>
    %6 = vector.extract_strided_slice %0 {offsets = [0, 5], sizes = [32, 1], strides = [1, 1]} : vector<32x6xf32> to vector<32x1xf32>
    %c0_1 = arith.constant 0 : index
    %7 = memref.load %arg5[%c0_1] : memref<4xf32, #tpu.memory_space<smem>>
    %c1 = arith.constant 1 : index
    %8 = memref.load %arg5[%c1] : memref<4xf32, #tpu.memory_space<smem>>
    %c2 = arith.constant 2 : index
    %9 = memref.load %arg5[%c2] : memref<4xf32, #tpu.memory_space<smem>>
    %c3 = arith.constant 3 : index
    %10 = memref.load %arg5[%c3] : memref<4xf32, #tpu.memory_space<smem>>
    %c0_2 = arith.constant 0 : index
    %c0_3 = arith.constant 0 : index
    %11 = vector.load %arg0[%c0_2, %c0_3] : memref<4x128xf32, #tpu.memory_space<vmem>>, vector<4x128xf32>
    %c0_4 = arith.constant 0 : index
    %c0_5 = arith.constant 0 : index
    %12 = vector.load %arg1[%c0_4, %c0_5] : memref<32x4xf32, #tpu.memory_space<vmem>>, vector<32x4xf32>
    %cst = arith.constant dense<0.000000e+00> : vector<32x128xf32>
    %13 = tpu.matmul %12, %11, %cst {dimension_numbers = #tpu.dot_dimension_numbers<[1], [0], [0], [1], [0, 0, 1, 1], [], []>} : vector<32x4xf32>, vector<4x128xf32>, vector<32x128xf32> -> vector<32x128xf32>
    %14 = vector.broadcast %1 : vector<32x1xf32> to vector<32x128xf32>
    %15 = arith.addf %13, %14 : vector<32x128xf32>
    %cst_6 = arith.constant 2.000000e-01 : f32
    %16 = vector.broadcast %cst_6 : f32 to vector<32x128xf32>
    %17 = arith.mulf %16, %15 : vector<32x128xf32>
    %18 = arith.maximumf %15, %17 : vector<32x128xf32>
    %cst_7 = arith.constant dense<0.000000e+00> : vector<32xf32>
    %19 = vector.multi_reduction <add>, %18, %cst_7 [1] : vector<32x128xf32> to vector<32xf32>
    %20 = vector.shape_cast %19 : vector<32xf32> to vector<32x1xf32>
    %cst_8 = arith.constant 7.812500e-03 : f32
    %21 = vector.broadcast %cst_8 : f32 to vector<32x1xf32>
    %22 = arith.mulf %20, %21 : vector<32x1xf32>
    %23 = arith.mulf %18, %18 : vector<32x128xf32>
    %cst_9 = arith.constant dense<0.000000e+00> : vector<32xf32>
    %24 = vector.multi_reduction <add>, %23, %cst_9 [1] : vector<32x128xf32> to vector<32xf32>
    %25 = vector.shape_cast %24 : vector<32xf32> to vector<32x1xf32>
    %cst_10 = arith.constant 7.812500e-03 : f32
    %26 = vector.broadcast %cst_10 : f32 to vector<32x1xf32>
    %27 = arith.mulf %25, %26 : vector<32x1xf32>
    %28 = arith.mulf %22, %22 : vector<32x1xf32>
    %29 = arith.subf %27, %28 : vector<32x1xf32>
    %cst_11 = arith.constant 0.000000e+00 : f32
    %30 = vector.broadcast %cst_11 : f32 to vector<32x1xf32>
    %31 = arith.maximumf %29, %30 : vector<32x1xf32>
    %32 = vector.broadcast %22 : vector<32x1xf32> to vector<32x128xf32>
    %33 = arith.subf %18, %32 : vector<32x128xf32>
    %cst_12 = arith.constant 9.99999974E-6 : f32
    %34 = vector.broadcast %cst_12 : f32 to vector<32x1xf32>
    %35 = arith.addf %31, %34 : vector<32x1xf32>
    %36 = math.rsqrt %35 : vector<32x1xf32>
    %37 = vector.broadcast %36 : vector<32x1xf32> to vector<32x128xf32>
    %38 = arith.mulf %33, %37 : vector<32x128xf32>
    %39 = vector.broadcast %2 : vector<32x1xf32> to vector<32x128xf32>
    %40 = arith.mulf %38, %39 : vector<32x128xf32>
    %41 = vector.broadcast %3 : vector<32x1xf32> to vector<32x128xf32>
    %42 = arith.addf %40, %41 : vector<32x128xf32>
    %c0_13 = arith.constant 0 : index
    %c0_14 = arith.constant 0 : index
    %43 = vector.load %arg2[%c0_13, %c0_14] : memref<32x32xf32, #tpu.memory_space<vmem>>, vector<32x32xf32>
    %cst_15 = arith.constant dense<0.000000e+00> : vector<32x128xf32>
    %44 = tpu.matmul %43, %42, %cst_15 {dimension_numbers = #tpu.dot_dimension_numbers<[1], [0], [0], [1], [0, 0, 1, 1], [], []>} : vector<32x32xf32>, vector<32x128xf32>, vector<32x128xf32> -> vector<32x128xf32>
    %45 = vector.broadcast %4 : vector<32x1xf32> to vector<32x128xf32>
    %46 = arith.addf %44, %45 : vector<32x128xf32>
    %cst_16 = arith.constant 2.000000e-01 : f32
    %47 = vector.broadcast %cst_16 : f32 to vector<32x128xf32>
    %48 = arith.mulf %47, %46 : vector<32x128xf32>
    %49 = arith.maximumf %46, %48 : vector<32x128xf32>
    %cst_17 = arith.constant dense<0.000000e+00> : vector<32xf32>
    %50 = vector.multi_reduction <add>, %49, %cst_17 [1] : vector<32x128xf32> to vector<32xf32>
    %51 = vector.shape_cast %50 : vector<32xf32> to vector<32x1xf32>
    %cst_18 = arith.constant 7.812500e-03 : f32
    %52 = vector.broadcast %cst_18 : f32 to vector<32x1xf32>
    %53 = arith.mulf %51, %52 : vector<32x1xf32>
    %54 = arith.mulf %49, %49 : vector<32x128xf32>
    %cst_19 = arith.constant dense<0.000000e+00> : vector<32xf32>
    %55 = vector.multi_reduction <add>, %54, %cst_19 [1] : vector<32x128xf32> to vector<32xf32>
    %56 = vector.shape_cast %55 : vector<32xf32> to vector<32x1xf32>
    %cst_20 = arith.constant 7.812500e-03 : f32
    %57 = vector.broadcast %cst_20 : f32 to vector<32x1xf32>
    %58 = arith.mulf %56, %57 : vector<32x1xf32>
    %59 = arith.mulf %53, %53 : vector<32x1xf32>
    %60 = arith.subf %58, %59 : vector<32x1xf32>
    %cst_21 = arith.constant 0.000000e+00 : f32
    %61 = vector.broadcast %cst_21 : f32 to vector<32x1xf32>
    %62 = arith.maximumf %60, %61 : vector<32x1xf32>
    %63 = vector.broadcast %53 : vector<32x1xf32> to vector<32x128xf32>
    %64 = arith.subf %49, %63 : vector<32x128xf32>
    %cst_22 = arith.constant 9.99999974E-6 : f32
    %65 = vector.broadcast %cst_22 : f32 to vector<32x1xf32>
    %66 = arith.addf %62, %65 : vector<32x1xf32>
    %67 = math.rsqrt %66 : vector<32x1xf32>
    %68 = vector.broadcast %67 : vector<32x1xf32> to vector<32x128xf32>
    %69 = arith.mulf %64, %68 : vector<32x128xf32>
    %70 = vector.broadcast %5 : vector<32x1xf32> to vector<32x128xf32>
    %71 = arith.mulf %69, %70 : vector<32x128xf32>
    %72 = vector.broadcast %6 : vector<32x1xf32> to vector<32x128xf32>
    %73 = arith.addf %71, %72 : vector<32x128xf32>
    %c0_23 = arith.constant 0 : index
    %c0_24 = arith.constant 0 : index
    %74 = vector.load %arg3[%c0_23, %c0_24] : memref<32x1xf32, #tpu.memory_space<vmem>>, vector<32x1xf32>
    %75 = vector.broadcast %74 : vector<32x1xf32> to vector<32x128xf32>
    %76 = arith.mulf %75, %73 : vector<32x128xf32>
    %cst_25 = arith.constant dense<0.000000e+00> : vector<128xf32>
    %77 = vector.multi_reduction <add>, %76, %cst_25 [0] : vector<32x128xf32> to vector<128xf32>
    %78 = vector.shape_cast %77 : vector<128xf32> to vector<1x128xf32>
    %79 = vector.broadcast %8 : f32 to vector<1x128xf32>
    %80 = arith.addf %78, %79 : vector<1x128xf32>
    %cst_26 = arith.constant dense<0.000000e+00> : vector<1xf32>
    %81 = vector.multi_reduction <add>, %80, %cst_26 [1] : vector<1x128xf32> to vector<1xf32>
    %82 = vector.shape_cast %81 : vector<1xf32> to vector<1x1xf32>
    %cst_27 = arith.constant 7.812500e-03 : f32
    %83 = vector.broadcast %cst_27 : f32 to vector<1x1xf32>
    %84 = arith.mulf %82, %83 : vector<1x1xf32>
    %85 = vector.broadcast %84 : vector<1x1xf32> to vector<1x128xf32>
    %86 = arith.subf %80, %85 : vector<1x128xf32>
    %87 = arith.mulf %86, %86 : vector<1x128xf32>
    %cst_28 = arith.constant dense<0.000000e+00> : vector<1xf32>
    %88 = vector.multi_reduction <add>, %87, %cst_28 [1] : vector<1x128xf32> to vector<1xf32>
    %89 = vector.shape_cast %88 : vector<1xf32> to vector<1x1xf32>
    %cst_29 = arith.constant 7.812500e-03 : f32
    %90 = vector.broadcast %cst_29 : f32 to vector<1x1xf32>
    %91 = arith.mulf %89, %90 : vector<1x1xf32>
    %92 = vector.broadcast %84 : vector<1x1xf32> to vector<1x128xf32>
    %93 = arith.subf %80, %92 : vector<1x128xf32>
    %cst_30 = arith.constant 9.99999974E-6 : f32
    %94 = vector.broadcast %cst_30 : f32 to vector<1x1xf32>
    %95 = arith.addf %91, %94 : vector<1x1xf32>
    %96 = math.rsqrt %95 : vector<1x1xf32>
    %97 = vector.broadcast %96 : vector<1x1xf32> to vector<1x128xf32>
    %98 = arith.mulf %93, %97 : vector<1x128xf32>
    %99 = vector.broadcast %9 : f32 to vector<1x128xf32>
    %100 = arith.mulf %98, %99 : vector<1x128xf32>
    %101 = vector.broadcast %10 : f32 to vector<1x128xf32>
    %102 = arith.addf %100, %101 : vector<1x128xf32>
    %103 = vector.broadcast %7 : f32 to vector<1x128xf32>
    %104 = arith.mulf %103, %102 : vector<1x128xf32>
    %105 = math.cos %104 : vector<1x128xf32>
    %c0_31 = arith.constant 0 : index
    %c0_32 = arith.constant 0 : index
    %106 = vector.load %arg6[%c0_31, %c0_32] : memref<2x128xf32, #tpu.memory_space<vmem>>, vector<1x128xf32>
    tpu.vector_store %arg6[%c0_31, %c0_32], %105 {strides = array<i32>} : memref<2x128xf32, #tpu.memory_space<vmem>>, vector<1x128xf32>,
    %107 = math.sin %104 : vector<1x128xf32>
    %c1_33 = arith.constant 1 : index
    %c0_34 = arith.constant 0 : index
    %108 = vector.load %arg6[%c1_33, %c0_34] : memref<2x128xf32, #tpu.memory_space<vmem>>, vector<1x128xf32>
    tpu.vector_store %arg6[%c1_33, %c0_34], %107 {strides = array<i32>} : memref<2x128xf32, #tpu.memory_space<vmem>>, vector<1x128xf32>,
    return
  }
}

</mosaic_0001>

<bundles_post_ra>
// kernel: tpu_custom_call.1
= control target key start
LH: loop header
LB: loop body
LE: loop exit
PB: predicated region body
PF: predicated region fallthrough
CT: control target
= control target key end

     0   :  { %11 = vsyncpa [#allocation4], 0  ;;  %s1170_s0 = inlined_call_operand.vmem [shape: f32[4,128], index: 0, kind: input, shape index: {}]   ;;  %s1171_s1 = inlined_call_operand.vmem [shape: f32[32,4], index: 1, kind: input, shape index: {}]   ;;  %s1172_s2 = inlined_call_operand.vmem [shape: f32[32,32], index: 2, kind: input, shape index: {}]   ;;  %s1173_s3 = inlined_call_operand.vmem [shape: f32[32,1], index: 3, kind: input, shape index: {}]   ;;  %s1174_s4 = inlined_call_operand.vmem [shape: f32[32,6], index: 4, kind: input, shape index: {}]   ;;  %s1175_s5 = inlined_call_operand.vmem [shape: f32[4], index: 5, kind: input, shape index: {}]   ;;  %s1176_s6 = inlined_call_operand.hbm [shape: f32[2,128], index: 6, kind: output, shape index: {}]  }
   0x1   :  { %12 = vsyncpa [#allocation3], 0  ;;  %s29_s23 = sshll.u32 %s1175_s5, 4  ;;  %s30_s23 = int_to_ptr.vmem [resolvable:$true] %s29_s23 }
   0x2   :  { %s903_s24 = scalar_lea.vmem %s30_s23, 16  ;;  %p908_p1 = scmp.lt.s32.totalorder %s30_s23, %s30_s23 }
   0x3   :  { %p904_p0 = scmp.ne.s32.totalorder %s30_s23, %s903_s24  ;;  %p909_p2 = scmp.lt.s32.totalorder %s903_s24, %s903_s24 }
   0x5   :  { %p910_p3 = por %p909_p2, %p908_p1 }
   0x7   :  { %p911_p4 = pnand %p910_p3, %p904_p0 }
   0x9   :  { %914 = shalt.err (!%p911_p4)
}
   0xa   :  { %s941_s25 = smov [#allocation2]  }
   0xb   :  { %32 = dma.vmem_to_smem %s30_s23, 16, %s941_s25, [#allocation4]  }
   0xc   :  { %937 = dma.done.wait [#allocation4], 16  }
   0xd   :  { %938 = vsyncadd [#allocation4], 4294967280 }
   0xe   :  { %36 = sfence }
   0xf   :  { %v45_v0 = vld [vmem:[%s1170_s0] sm:$0xf]  ;;  %vm83_vm0 = vcmask 1043456   ;;  %vm70_vm1 = vcmask 31744   ;;  %v47_v2 = vld [vmem:[%s1171_s1 + $0x8] sm:$0xff]  ;;  %v48_v3 = vld [vmem:[%s1171_s1 + $0x10] sm:$0xff] }
  0x10   :  { %v46_v1 = vld [vmem:[%s1171_s1] sm:$0xff]  ;;  %811 = vmatprep.subr.msk.mxu0 %vm83_vm0, %v45_v0  ;;  %v942_v5 = vmov 0   ;;  %v1015_v6 = vld [vmem:[%s1174_s4 + $0x10] sm:$0xff]  ;;  %v49_v7 = vld [vmem:[%s1171_s1 + $0x18] sm:$0xff]  ;;  %v943_v10 = vmov 1   ;;  %v944_v11 = vmov 2  }
  0x11   :  { %813 = vmatprep.mubr.msk.f32.mxu0 %vm70_vm1, %v46_v1  ;;  %v1009_v4 = vld [vmem:[%s1174_s4] sm:$0xff]  ;;  %812 = vmatpush3.msk.msra.mxu0 %vm83_vm0, %v45_v0  ;;  %v1026_v8 = vld [vmem:[%s1174_s4 + $0x8] sm:$0xff]  ;;  %v1033_v9 = vld [vmem:[%s1174_s4 + $0x18] sm:$0xff]  ;;  %vm296_vm2 = vcmask 261120   ;;  %v945_v38 = vmov 3   ;;  %v946_v39 = vmov 4  }
  0x12   :  { %863 = vset.pattern.permute.xlu0 %v942_v5  ;;  %814 = vmatmul.mubr.msk.f32.vlgmr.msra.gmra.mrb[0].mxu0 %vm70_vm1, %v47_v2  ;;  %v276_v36 = vld [vmem:[%s1172_s2] sm:$0xff]  ;;  %v278_v37 = vld [vmem:[%s1172_s2 + $0x10] sm:$0xff]  ;;  %v947_v44 = vmov 5   ;;  %s779_s30 = sld [smem:[#allocation2 + $0x2]]  ;;  %s780_s7 = sld [smem:[#allocation2 + $0x3]] }
  0x13   :  { %52 = vperm.xlu0 %863, %v1009_v4   ;;  %816 = vmatprep.mubr.msk.f32.mxu0 %vm70_vm1, %v48_v3  ;;  %v498_v60 = vld [vmem:[%s1173_s3] sm:$0xff]  ;;  %s41_s8 = sld [smem:[#allocation2]]  ;;  %s954_s9 = smov [#allocation5]  }
  0x14   :  { %864 = vset.pattern.permute.xlu1 %v942_v5  ;;  %830 = vmatprep.mubr.msk.f32.mxu1 %vm296_vm2, %v278_v37  ;;  %s769_s10 = sshll.u32 %s954_s9, 4  ;;  %s770_s10 = int_to_ptr.vmem [resolvable:$true] %s769_s10 }
  0x15   :  { %62 = vperm.xlu1 %864, %v1015_v6   ;;  %s915_s0 = scalar_lea.vmem %s770_s10, 32  ;;  %p920_p6 = scmp.lt.s32.totalorder %s770_s10, %s770_s10 }
  0x16   :  { %817 = vmatmul.mubr.msk.f32.gmra.mrb[2].mxu0 %vm70_vm1, %v49_v7  ;;  %p916_p5 = scmp.ne.s32.totalorder %s770_s10, %s915_s0  ;;  %p921_p7 = scmp.lt.s32.totalorder %s915_s0, %s915_s0 }
  0x17   :  { %57 = vperm.xlu0 %863, %v1026_v8   ;;  %827 = vmatprep.mubr.msk.f32.mxu0 %vm296_vm2, %v276_v36 }
  0x18   :  { %p922_p8 = por %p921_p7, %p920_p6 }
  0x19   :  { %67 = vperm.xlu1 %864, %v1033_v9  }
  0x1a   :  { %p923_p9 = pnand %p922_p8, %p916_p5 }
  0x1b   :  { %866 = vset.pattern.permute.xlu0 %v943_v10 }
  0x1d   :  { %865 = vset.pattern.permute.xlu1 %v943_v10 }
  0x1e   :  { %237 = vperm.xlu1 %865, %v1009_v4  }
  0x22   :  { %867 = vset.pattern.permute.xlu1 %v944_v11 }
  0x92   :  { %v53_v12 = vpop.permute.xlu0 %52 }
  0x94   :  { %v63_v16 = vpop.permute.xlu1 %62 }
  0x96   :  { %v58_v13 = vpop.permute.xlu0 %57 }
  0x98   :  { %v68_v26 = vpop.permute.xlu1 %67 }
  0x9d   :  { %v238_v40 = vpop.permute.xlu1 %237 }
  0xe5   :  { %v815_v14 = vpop.f32.mrb[0].mxu0 }
  0xe6   :  { %v159_v15 = vadd.f32 %v815_v14, %v58_v13  ;;  %v153_v17 = vpop.f32.mrb[1].mxu0 }
  0xe7   :  { %v154_v18 = vadd.f32 %v153_v17, %v53_v12 }
  0xe8   :  { %v173_v19 = vmul.f32 0.2, %v159_v15 }
  0xe9   :  { %v172_v20 = vmul.f32 0.2, %v154_v18  ;;  %v818_v21 = vpop.f32.mrb[2].mxu0 }
  0xea   :  { %v1039_v22 = vmax.f32 %v159_v15, %v173_v19  ;;  %v163_v23 = vpop.f32.mrb[3].mxu0  ;;  %v169_v28 = vadd.f32 %v818_v21, %v68_v26 }
  0xeb   :  { %v1041_v24 = vmax.f32 %v154_v18, %v172_v20  ;;  %v164_v25 = vadd.f32 %v163_v23, %v63_v16 }
  0xec   :  { %182 = vadd.xlane.f32.xlu1 %v1039_v22  ;;  %v193_v30 = vmul.f32 %v1039_v22, %v1039_v22  ;;  %v175_v31 = vmul.f32 0.2, %v169_v28 }
  0xed   :  { %v174_v27 = vmul.f32 0.2, %v164_v25  ;;  %180 = vadd.xlane.f32.xlu0 %v1041_v24  ;;  %v192_v32 = vmul.f32 %v1041_v24, %v1041_v24 }
  0xee   :  { %v1052_v33 = vmax.f32 %v169_v28, %v175_v31 }
  0xef   :  { %v1045_v29 = vmax.f32 %v164_v25, %v174_v27 }
  0xf0   :  { %v195_v34 = vmul.f32 %v1052_v33, %v1052_v33 }
  0xf1   :  { %184 = vadd.xlane.f32.xlu1 %v1045_v29  ;;  %198 = vadd.xlane.f32.xlu0 %v193_v30  ;;  %v194_v35 = vmul.f32 %v1045_v29, %v1045_v29 }
  0xf5   :  { %196 = vadd.xlane.f32.xlu0 %v192_v32 }
  0xf9   :  { %186 = vadd.xlane.f32.xlu0 %v1052_v33 }
  0xfd   :  { %202 = vadd.xlane.f32.xlu0 %v195_v34 }
 0x102   :  { %257 = vperm.xlu1 %867, %v1009_v4  }
 0x106   :  { %261 = vperm.xlu1 %867, %v1026_v8  }
 0x10a   :  { %868 = vset.pattern.permute.xlu1 %v943_v10 }
 0x10b   :  { %245 = vperm.xlu1 %868, %v1015_v6  }
 0x10f   :  { %249 = vperm.xlu1 %868, %v1033_v9  }
 0x113   :  { %869 = vset.pattern.permute.xlu1 %v944_v11  ;;  %241 = vperm.xlu0 %866, %v1026_v8  }
 0x114   :  { %265 = vperm.xlu1 %869, %v1015_v6  }
 0x117   :  { %871 = vset.pattern.permute.xlu0 %v945_v38 }
 0x118   :  { %289 = vperm.xlu0 %871, %v1015_v6  }
 0x11c   :  { %872 = vset.pattern.permute.xlu0 %v946_v39 }
 0x11d   :  { %459 = vperm.xlu0 %872, %v1009_v4  }
 0x121   :  { %878 = vset.pattern.permute.xlu0 %v942_v5 }
 0x138   :  { %200 = vadd.xlane.f32.xlu1 %v194_v35 }
 0x149   :  { %269 = vperm.xlu1 %869, %v1033_v9  }
 0x14d   :  { %870 = vset.pattern.permute.xlu1 %v945_v38 }
 0x14e   :  { %281 = vperm.xlu1 %870, %v1009_v4  }
 0x152   :  { %285 = vperm.xlu1 %870, %v1026_v8  }
 0x156   :  { %293 = vperm.xlu1 %870, %v1033_v9  }
 0x15a   :  { %873 = vset.pattern.permute.xlu1 %v946_v39 }
 0x15b   :  { %463 = vperm.xlu1 %873, %v1026_v8  }
 0x15f   :  { %467 = vperm.xlu1 %873, %v1015_v6  }
 0x163   :  { %874 = vset.pattern.permute.xlu1 %v947_v44 }
 0x164   :  { %479 = vperm.xlu1 %874, %v1009_v4  }
 0x168   :  { %483 = vperm.xlu1 %874, %v1026_v8  }
 0x16c   :  { %875 = vset.pattern.permute.xlu1 %v946_v39 }
 0x16d   :  { %471 = vperm.xlu1 %875, %v1033_v9  }
 0x171   :  { %876 = vset.pattern.permute.xlu1 %v947_v44 }
 0x172   :  { %487 = vperm.xlu1 %876, %v1015_v6  }
 0x176   :  { %877 = vset.pattern.permute.xlu1 %v942_v5 }
 0x177   :  { %504 = vperm.xlu1 %877, %v498_v60  }
 0x179   :  { %v183_v41 = vpop.xlane.xlu1 %182 }
 0x17a   :  { %v181_v42 = vpop.xlane.xlu0 %180  ;;  %v189_v43 = vmul.f32 0.0078125, %v183_v41 }
 0x17b   :  { %v188_v47 = vmul.f32 0.0078125, %v181_v42  ;;  %879 = vset.pattern.permute.xlu1 %v947_v44  ;;  %v277_v44 = vld [vmem:[%s1172_s2 + $0x8] sm:$0xff] }
 0x17c   :  { %v209_v46 = vmul.f32 %v189_v43, %v189_v43  ;;  %v221_v62 = vsub.f32 %v1039_v22, %v189_v43 }
 0x17d   :  { %v208_v51 = vmul.f32 %v188_v47, %v188_v47  ;;  %v220_v3 = vsub.f32 %v1041_v24, %v188_v47 }
 0x17e   :  { %v199_v45 = vpop.xlane.xlu0 %198  ;;  %v185_v59 = vpop.xlane.xlu1 %184 }
 0x17f   :  { %v205_v48 = vmul.f32 0.0078125, %v199_v45  ;;  %v190_v21 = vmul.f32 0.0078125, %v185_v59 }
 0x181   :  { %v213_v49 = vsub.f32 %v205_v48, %v209_v46  ;;  %v210_v24 = vmul.f32 %v190_v21, %v190_v21  ;;  %v222_v34 = vsub.f32 %v1045_v29, %v190_v21  ;;  %v279_v29 = vld [vmem:[%s1172_s2 + $0x18] sm:$0xff] }
 0x182   :  { %v197_v50 = vpop.xlane.xlu0 %196  ;;  %v258_v1 = vpop.permute.xlu1 %257 }
 0x183   :  { %v217_v52 = vmax.f32 %v213_v49, 0.0  ;;  %v204_v53 = vmul.f32 0.0078125, %v197_v50 }
 0x185   :  { %v225_v54 = vadd.f32 1e-05, %v217_v52  ;;  %v212_v55 = vsub.f32 %v204_v53, %v208_v51 }
 0x186   :  { %v187_v58 = vpop.xlane.xlu0 %186  ;;  %v262_v10 = vpop.permute.xlu1 %261 }
 0x187   :  { %881 = vrsqrt.f32 %v225_v54  ;;  %v216_v56 = vmax.f32 %v212_v55, 0.0  ;;  %v191_v15 = vmul.f32 0.0078125, %v187_v58 }
 0x189   :  { %v224_v57 = vadd.f32 1e-05, %v216_v56  ;;  %v211_v18 = vmul.f32 %v191_v15, %v191_v15  ;;  %v223_v32 = vsub.f32 %v1052_v33, %v191_v15 }
 0x18a   :  { %v203_v61 = vpop.xlane.xlu0 %202  ;;  %v246_v14 = vpop.permute.xlu1 %245 }
 0x18b   :  { %883 = vrsqrt.f32 %v224_v57  ;;  %v207_v16 = vmul.f32 0.0078125, %v203_v61 }
 0x18d   :  { %v215_v19 = vsub.f32 %v207_v16, %v211_v18 }
 0x18e   :  { %v250_v17 = vpop.permute.xlu1 %249 }
 0x18f   :  { %v219_v22 = vmax.f32 %v215_v19, 0.0 }
 0x191   :  { %v882_v63 = vpop.eup %881  ;;  %v227_v25 = vadd.f32 1e-05, %v219_v22 }
 0x192   :  { %v233_v0 = vmul.f32 %v882_v63, %v221_v62  ;;  %v242_v2 = vpop.permute.xlu0 %241 }
 0x193   :  { %v266_v20 = vpop.permute.xlu1 %265  ;;  %885 = vrsqrt.f32 %v227_v25 }
 0x194   :  { %v253_v7 = vmul.f32 %v242_v2, %v233_v0 }
 0x195   :  { %v884_v4 = vpop.eup %883 }
 0x196   :  { %v232_v6 = vmul.f32 %v884_v4, %v220_v3  ;;  %v273_v12 = vadd.f32 %v262_v10, %v253_v7  ;;  %v499_v4 = vld [vmem:[%s1173_s3 + $0x8] sm:$0xff]  ;;  %v501_v7 = vld [vmem:[%s1173_s3 + $0x18] sm:$0xff] }
 0x197   :  { %v290_v47 = vpop.permute.xlu0 %289 }
 0x198   :  { %v252_v8 = vmul.f32 %v238_v40, %v232_v6  ;;  %v500_v6 = vld [vmem:[%s1173_s3 + $0x10] sm:$0xff]  ;;  %s778_s3 = sld [smem:[#allocation2 + $0x1]] }
 0x19a   :  { %v272_v11 = vadd.f32 %v258_v1, %v252_v8 }
 0x19c   :  { %v833_v13 = vpack.c.bf16 %v273_v12, %v272_v11  ;;  %v460_v15 = vpop.permute.xlu0 %459 }
 0x19d   :  { %v886_v31 = vpop.eup %885 }
 0x19e   :  { %834 = vmatprep.subr.bf16.mxu0 %v833_v13  ;;  %841 = vmatprep.subr.bf16.mxu1 %v833_v13  ;;  %v235_v35 = vmul.f32 %v886_v31, %v223_v32 }
 0x19f   :  { %836 = vmatpush3.bf16.msra.mxu0 %v833_v13  ;;  %843 = vmatpush3.bf16.msra.mxu1 %v833_v13 }
 0x1a0   :  { %v255_v39 = vmul.f32 %v250_v17, %v235_v35 }
 0x1c5   :  { %v201_v23 = vpop.xlane.xlu1 %200 }
 0x1c6   :  { %v206_v26 = vmul.f32 0.0078125, %v201_v23 }
 0x1c8   :  { %v214_v27 = vsub.f32 %v206_v26, %v210_v24 }
 0x1c9   :  { %v270_v38 = vpop.permute.xlu1 %269 }
 0x1ca   :  { %v218_v28 = vmax.f32 %v214_v27, 0.0  ;;  %v275_v42 = vadd.f32 %v270_v38, %v255_v39 }
 0x1cc   :  { %v226_v30 = vadd.f32 1e-05, %v218_v28 }
 0x1cd   :  { %v282_v33 = vpop.permute.xlu1 %281 }
 0x1ce   :  { %887 = vrsqrt.f32 %v226_v30 }
 0x1d1   :  { %v286_v45 = vpop.permute.xlu1 %285 }
 0x1d5   :  { %v294_v46 = vpop.permute.xlu1 %293 }
 0x1d8   :  { %v888_v36 = vpop.eup %887 }
 0x1d9   :  { %v234_v37 = vmul.f32 %v888_v36, %v222_v34 }
 0x1da   :  { %v464_v8 = vpop.permute.xlu1 %463 }
 0x1db   :  { %v254_v40 = vmul.f32 %v246_v14, %v234_v37 }
 0x1dd   :  { %v274_v41 = vadd.f32 %v266_v20, %v254_v40 }
 0x1de   :  { %v468_v10 = vpop.permute.xlu1 %467 }
 0x1df   :  { %v837_v43 = vpack.c.bf16 %v275_v42, %v274_v41 }
 0x1e1   :  { %838 = vmatprep.subr.bf16.mxu0 %v837_v43  ;;  %842 = vmatprep.subr.bf16.mxu1 %v837_v43 }
 0x1e2   :  { %840 = vmatpush3.bf16.msra.mxu0 %v837_v43  ;;  %844 = vmatpush3.bf16.msra.mxu1 %v837_v43 }
 0x1e5   :  { %828 = vmatmul.mubr.msk.f32.vlgmr.msra.gmra.mrb[4].mxu0 %vm296_vm2, %v277_v44  ;;  %831 = vmatmul.mubr.msk.f32.vlgmr.msra.gmra.mrb[0].mxu1 %vm296_vm2, %v279_v29 }
 0x2b8   :  { %v829_v48 = vpop.f32.mrb[4].mxu0  ;;  %v832_v49 = vpop.f32.mrb[0].mxu1 }
 0x2b9   :  { %v381_v50 = vadd.f32 %v829_v48, %v286_v45  ;;  %v391_v51 = vadd.f32 %v832_v49, %v294_v46  ;;  %v375_v52 = vpop.f32.mrb[5].mxu0  ;;  %v385_v53 = vpop.f32.mrb[1].mxu1 }
 0x2ba   :  { %v376_v54 = vadd.f32 %v375_v52, %v282_v33  ;;  %v386_v55 = vadd.f32 %v385_v53, %v290_v47 }
 0x2bb   :  { %v395_v56 = vmul.f32 0.2, %v381_v50  ;;  %v397_v57 = vmul.f32 0.2, %v391_v51 }
 0x2bc   :  { %v394_v60 = vmul.f32 0.2, %v376_v54  ;;  %v396_v61 = vmul.f32 0.2, %v386_v55 }
 0x2bd   :  { %v1102_v58 = vmax.f32 %v381_v50, %v395_v56  ;;  %v1104_v59 = vmax.f32 %v391_v51, %v397_v57 }
 0x2be   :  { %v1108_v62 = vmax.f32 %v376_v54, %v394_v60  ;;  %v1110_v63 = vmax.f32 %v386_v55, %v396_v61 }
 0x2bf   :  { %408 = vadd.xlane.f32.xlu1 %v1104_v59  ;;  %404 = vadd.xlane.f32.xlu0 %v1102_v58  ;;  %v417_v0 = vmul.f32 %v1104_v59, %v1104_v59  ;;  %v415_v1 = vmul.f32 %v1102_v58, %v1102_v58 }
 0x2c0   :  { %v414_v2 = vmul.f32 %v1108_v62, %v1108_v62  ;;  %v416_v3 = vmul.f32 %v1110_v63, %v1110_v63 }
 0x2c3   :  { %402 = vadd.xlane.f32.xlu1 %v1108_v62  ;;  %406 = vadd.xlane.f32.xlu0 %v1110_v63 }
 0x2c7   :  { %424 = vadd.xlane.f32.xlu1 %v417_v0  ;;  %420 = vadd.xlane.f32.xlu0 %v415_v1 }
 0x2cb   :  { %418 = vadd.xlane.f32.xlu1 %v414_v2  ;;  %422 = vadd.xlane.f32.xlu0 %v416_v3 }
 0x2dc   :  { %491 = vperm.xlu1 %879, %v1033_v9   ;;  %v480_v9 = vpop.permute.xlu1 %479 }
 0x2e0   :  { %880 = vset.pattern.permute.xlu1 %v942_v5  ;;  %v484_v11 = vpop.permute.xlu1 %483 }
 0x2e1   :  { %509 = vperm.xlu0 %878, %v499_v4   ;;  %514 = vperm.xlu1 %880, %v500_v6  }
 0x2e4   :  { %v472_v12 = vpop.permute.xlu1 %471 }
 0x2e5   :  { %519 = vperm.xlu0 %878, %v501_v7  }
 0x2e8   :  { %v488_v13 = vpop.permute.xlu1 %487 }
 0x2ec   :  { %v505_v14 = vpop.permute.xlu1 %504 }
 0x34c   :  { %v409_v16 = vpop.xlane.xlu1 %408  ;;  %v405_v17 = vpop.xlane.xlu0 %404 }
 0x34d   :  { %v413_v5 = vmul.f32 0.0078125, %v409_v16  ;;  %v411_v20 = vmul.f32 0.0078125, %v405_v17 }
 0x34f   :  { %v433_v25 = vmul.f32 %v413_v5, %v413_v5  ;;  %v431_v26 = vmul.f32 %v411_v20, %v411_v20  ;;  %v443_v48 = vsub.f32 %v1102_v58, %v411_v20  ;;  %v445_v50 = vsub.f32 %v1104_v59, %v413_v5 }
 0x350   :  { %v403_v18 = vpop.xlane.xlu1 %402  ;;  %v407_v19 = vpop.xlane.xlu0 %406 }
 0x351   :  { %v410_v21 = vmul.f32 0.0078125, %v403_v18  ;;  %v412_v22 = vmul.f32 0.0078125, %v407_v19 }
 0x353   :  { %v430_v32 = vmul.f32 %v410_v21, %v410_v21  ;;  %v432_v34 = vmul.f32 %v412_v22, %v412_v22  ;;  %v442_v52 = vsub.f32 %v1108_v62, %v410_v21  ;;  %v444_v55 = vsub.f32 %v1110_v63, %v412_v22 }
 0x354   :  { %v425_v23 = vpop.xlane.xlu1 %424  ;;  %v421_v24 = vpop.xlane.xlu0 %420 }
 0x355   :  { %v429_v27 = vmul.f32 0.0078125, %v425_v23  ;;  %v427_v28 = vmul.f32 0.0078125, %v421_v24 }
 0x357   :  { %v437_v30 = vsub.f32 %v429_v27, %v433_v25  ;;  %v435_v31 = vsub.f32 %v427_v28, %v431_v26 }
 0x358   :  { %v419_v35 = vpop.xlane.xlu1 %418  ;;  %v423_v36 = vpop.xlane.xlu0 %422 }
 0x359   :  { %v441_v37 = vmax.f32 %v437_v30, 0.0  ;;  %v439_v38 = vmax.f32 %v435_v31, 0.0  ;;  %v426_v39 = vmul.f32 0.0078125, %v419_v35  ;;  %v428_v40 = vmul.f32 0.0078125, %v423_v36 }
 0x35a   :  { %v548_v31 = vstv %s779_s30  ;;  %v552_v36 = vstv %s41_s8 }
 0x35b   :  { %v449_v41 = vadd.f32 1e-05, %v441_v37  ;;  %v447_v42 = vadd.f32 1e-05, %v439_v38  ;;  %v434_v43 = vsub.f32 %v426_v39, %v430_v32  ;;  %v436_v44 = vsub.f32 %v428_v40, %v432_v34 }
 0x35c   :  { %v492_v0 = vpop.permute.xlu1 %491  ;;  %v550_v34 = vstv %s780_s7 }
 0x35d   :  { %889 = vrsqrt.f32 %v449_v41  ;;  %v438_v29 = vmax.f32 %v434_v43, 0.0  ;;  %v440_v33 = vmax.f32 %v436_v44, 0.0 }
 0x35e   :  { %891 = vrsqrt.f32 %v447_v42 }
 0x35f   :  { %v446_v45 = vadd.f32 1e-05, %v438_v29  ;;  %v448_v46 = vadd.f32 1e-05, %v440_v33 }
 0x360   :  { %v510_v61 = vpop.permute.xlu0 %509  ;;  %v515_v7 = vpop.permute.xlu1 %514 }
 0x361   :  { %893 = vrsqrt.f32 %v446_v45 }
 0x362   :  { %895 = vrsqrt.f32 %v448_v46 }
 0x364   :  { %v520_v18 = vpop.permute.xlu0 %519 }
 0x367   :  { %v890_v47 = vpop.eup %889 }
 0x368   :  { %v892_v49 = vpop.eup %891  ;;  %v457_v53 = vmul.f32 %v890_v47, %v445_v50  ;;  %v948_v47 = vmov 683565275  }
 0x369   :  { %v455_v51 = vmul.f32 %v892_v49, %v443_v48  ;;  %v949_v49 = vmov 2475754826  }
 0x36a   :  { %v477_v4 = vmul.f32 %v472_v12, %v457_v53  ;;  %v535_v12 = vstv %s778_s3 }
 0x36b   :  { %v894_v54 = vpop.eup %893  ;;  %v475_v56 = vmul.f32 %v464_v8, %v455_v51 }
 0x36c   :  { %v896_v57 = vpop.eup %895  ;;  %v454_v60 = vmul.f32 %v894_v54, %v442_v52  ;;  %v497_v62 = vadd.f32 %v492_v0, %v477_v4  ;;  %v950_v52 = vmov 2131351028  }
 0x36d   :  { %v456_v1 = vmul.f32 %v896_v57, %v444_v55  ;;  %v495_v3 = vadd.f32 %v484_v11, %v475_v56  ;;  %v951_v55 = vmov 2102212464  }
 0x36e   :  { %v474_v2 = vmul.f32 %v460_v15, %v454_v60  ;;  %v525_v63 = vmul.f32 %v520_v18, %v497_v62  ;;  %v952_v60 = vmov 920167782  }
 0x36f   :  { %v476_v58 = vmul.f32 %v468_v10, %v456_v1  ;;  %v523_v17 = vmul.f32 %v510_v61, %v495_v3  ;;  %v953_v1 = vmov 1326507024  }
 0x370   :  { %v494_v6 = vadd.f32 %v480_v9, %v474_v2 }
 0x371   :  { %v496_v59 = vadd.f32 %v488_v13, %v476_v58 }
 0x372   :  { %v522_v16 = vmul.f32 %v505_v14, %v494_v6 }
 0x373   :  { %v524_v5 = vmul.f32 %v515_v7, %v496_v59 }
 0x374   :  { %v526_v19 = vadd.f32 %v523_v17, %v522_v16 }
 0x376   :  { %v527_v8 = vadd.f32 %v526_v19, %v524_v5 }
 0x378   :  { %v528_v20 = vadd.f32 %v527_v8, %v525_v63 }
 0x37a   :  { %v529_v21 = vrot.slane %v528_v20, 4 }
 0x37c   :  { %v530_v22 = vadd.f32 %v529_v21, %v528_v20 }
 0x37e   :  { %v531_v23 = vrot.slane %v530_v22, 2 }
 0x380   :  { %v532_v15 = vadd.f32 %v531_v23, %v530_v22 }
 0x382   :  { %v533_v11 = vrot.slane %v532_v15, 1 }
 0x384   :  { %v534_v10 = vadd.f32 %v533_v11, %v532_v15 }
 0x386   :  { %v536_v9 = vadd.f32 %v535_v12, %v534_v10 }
 0x388   :  { %537 = vadd.xlane.f32.xlu1 %v536_v9 }
 0x415   :  { %v538_v13 = vpop.xlane.xlu1 %537 }
 0x416   :  { %v539_v14 = vmul.f32 0.0078125, %v538_v13 }
 0x418   :  { %v540_v24 = vsub.f32 %v536_v9, %v539_v14 }
 0x41a   :  { %v541_v25 = vmul.f32 %v540_v24, %v540_v24 }
 0x41c   :  { %542 = vadd.xlane.f32.xlu0 %v541_v25 }
 0x4a9   :  { %v543_v26 = vpop.xlane.xlu0 %542 }
 0x4aa   :  { %v544_v27 = vmul.f32 0.0078125, %v543_v26 }
 0x4ac   :  { %v545_v28 = vadd.f32 1e-05, %v544_v27 }
 0x4ae   :  { %897 = vrsqrt.f32 %v545_v28 }
 0x4b8   :  { %v898_v30 = vpop.eup %897 }
 0x4b9   :  { %v547_v32 = vmul.f32 %v898_v30, %v540_v24 }
 0x4bb   :  { %v549_v35 = vmul.f32 %v548_v31, %v547_v32 }
 0x4bd   :  { %v551_v37 = vadd.f32 %v550_v34, %v549_v35 }
 0x4bf   :  { %v1137_v38 = vmul.f32 %v552_v36, %v551_v37 }
 0x4c1   :  { %v557_v39 = vand.u32 2139095040, %v1137_v38  ;;  %v554_v43 = vand.u32 2147483647, %v1137_v38  ;;  %vm556_vm10 = vcmp.lt.s32.totalorder %v1137_v38, 0  ;;  %vm646_vm2 = vweird.f32 %v1137_v38 }
 0x4c3   :  { %v558_v40 = vshrl.u32 %v557_v39, 23  ;;  %v561_v33 = vand.u32 8388607, %v554_v43  ;;  %vm555_vm11 = vcmp.le.f32.partialorder %v554_v43, 0.7853982 }
 0x4c5   :  { %v790_v41 = vadd.s32 4294967169, %v558_v40  ;;  %v562_v3 = vor.u32 8388608, %v561_v33 }
 0x4c7   :  { %v564_v42 = vadd.s32 1, %v790_v41  ;;  %v602_v20 = vshll.u32 %v562_v3, 8 }
 0x4c9   :  { %vm565_vm3 = vcmp.gt.s32.totalorder %v564_v42, 0 }
 0x4ca   :  { %v566_v44 = vsel %vm565_vm3, %v564_v42, 0 }
 0x4cb   :  { %v568_v29 = vand.u32 31, %v566_v44  ;;  %v567_v46 = vshrl.u32 %v566_v44, 5 }
 0x4cd   :  { %v569_v45 = vsub.s32 32, %v568_v29  ;;  %v571_v48 = vshll.u32 %v948_v47, %v568_v29  ;;  %v574_v50 = vshll.u32 %v949_v49, %v568_v29  ;;  %v577_v54 = vshll.u32 %v950_v52, %v568_v29 }
 0x4ce   :  { %v580_v57 = vshll.u32 %v951_v55, %v568_v29  ;;  %v583_v0 = vshll.u32 %v952_v60, %v568_v29  ;;  %vm586_vm4 = vcmp.lt.s32.totalorder %v567_v46, 1  ;;  %vm589_vm5 = vcmp.lt.s32.totalorder %v567_v46, 4 }
 0x4cf   :  { %v572_v51 = vshrl.u32 %v949_v49, %v569_v45  ;;  %v575_v53 = vshrl.u32 %v950_v52, %v569_v45  ;;  %v578_v56 = vshrl.u32 %v951_v55, %v569_v45  ;;  %v581_v61 = vshrl.u32 %v952_v60, %v569_v45 }
 0x4d0   :  { %v584_v2 = vshrl.u32 %v953_v1, %v569_v45  ;;  %v570_v18 = vshrl.u32 %v948_v47, %v569_v45  ;;  %vm588_vm6 = vcmp.lt.s32.totalorder %v567_v46, 3  ;;  %vm587_vm7 = vcmp.lt.s32.totalorder %v567_v46, 2 }
 0x4d1   :  { %v573_v4 = vor.u32 %v572_v51, %v571_v48  ;;  %v576_v58 = vor.u32 %v575_v53, %v574_v50  ;;  %v579_v6 = vor.u32 %v578_v56, %v577_v54  ;;  %v582_v7 = vor.u32 %v581_v61, %v580_v57 }
 0x4d2   :  { %v585_v59 = vor.u32 %v584_v2, %v583_v0 }
 0x4d3   :  { %v591_v16 = vsel %vm589_vm5, %v579_v6, 2102212464  ;;  %v594_v17 = vsel %vm586_vm4, %v573_v4, %v576_v58  ;;  %v598_v62 = vsel %vm586_vm4, %v576_v58, %v579_v6  ;;  %v595_v19 = vsel %vm589_vm5, %v582_v7, 920167782 }
 0x4d4   :  { %v599_v5 = vsel %vm589_vm5, %v585_v59, 1326507024  ;;  %v596_v63 = vsel %vm588_vm6, %v579_v6, %v595_v19  ;;  %v590_v21 = vsel %vm586_vm4, %v570_v18, %v573_v4  ;;  %v592_v22 = vsel %vm588_vm6, %v576_v58, %v591_v16 }
 0x4d5   :  { %v600_v8 = vsel %vm588_vm6, %v582_v7, %v599_v5  ;;  %v597_v23 = vsel %vm587_vm7, %v594_v17, %v596_v63  ;;  %v593_v13 = vsel %vm587_vm7, %v590_v21, %v592_v22 }
 0x4d6   :  { %v601_v15 = vsel %vm587_vm7, %v598_v62, %v600_v8  ;;  %v1146_v10 = vmul.u32.u64.low %v602_v20, %v597_v23  ;;  %v1147_v9 = vmul.u32.u64.high %v602_v20, %v597_v23, %v1146_v10  ;;  %v609_v24 = vmul.u32 %v602_v20, %v593_v13 }
 0x4d7   :  { %v1143_v11 = vmul.u32.u64.low %v602_v20, %v601_v15  ;;  %v1144_v12 = vmul.u32.u64.high %v602_v20, %v601_v15, %v1143_v11 }
 0x4d8   :  { %v612_v14 = vadd.s32 1, %v1147_v9 }
 0x4d9   :  { %vm611_vm8 = vc.u32 %v1144_v12, %v1146_v10  ;;  %v610_v39 = vadd.s32 %v1146_v10, %v1144_v12 }
 0x4da   :  { %v613_v25 = vsel %vm611_vm8, %v612_v14, %v1147_v9 }
 0x4db   :  { %v614_v26 = vadd.s32 %v613_v25, %v609_v24 }
 0x4dd   :  { %v615_v27 = vadd.s32 536870912, %v614_v26 }
 0x4df   :  { %v616_v28 = vshrl.u32 %v615_v27, 30 }
 0x4e1   :  { %v617_v30 = vshll.u32 %v616_v28, 30  ;;  %v640_v50 = vsub.s32 4, %v616_v28 }
 0x4e3   :  { %v618_v31 = vsub.s32 %v614_v26, %v617_v30  ;;  %v641_v53 = vsel %vm556_vm10, %v640_v50, %v616_v28 }
 0x4e4   :  { %v643_v55 = vsel %vm555_vm11, 0, %v641_v53 }
 0x4e5   :  { %v620_v32 = vsub.s32 0, %v618_v31  ;;  %v751_v56 = vadd.s32 3, %v643_v55  ;;  %v647_v57 = vand.u32 3, %v643_v55 }
 0x4e7   :  { %v791_v34 = vmin.u32 %v620_v32, %v618_v31  ;;  %v752_v60 = vand.u32 3, %v751_v56  ;;  %vm652_vm12 = vcmp.eq.s32.totalorder %v647_v57, 2  ;;  %vm649_vm14 = vcmp.eq.s32.totalorder %v647_v57, 0 }
 0x4e8   :  { %vm648_vm0 = vcmp.lt.s32.totalorder %v647_v57, 2 }
 0x4e9   :  { %v622_v35 = vclz %v791_v34  ;;  %vm757_vm13 = vcmp.eq.s32.totalorder %v752_v60, 2  ;;  %vm754_vm15 = vcmp.eq.s32.totalorder %v752_v60, 0  ;;  %vm753_vm1 = vcmp.lt.s32.totalorder %v752_v60, 2 }
 0x4eb   :  { %v792_v36 = vadd.s32 4294967294, %v622_v35 }
 0x4ed   :  { %vm793_vm9 = vcmp.lt.s32.totalorder %v792_v36, 0 }
 0x4ee   :  { %v625_v37 = vsel %vm793_vm9, 0, %v792_v36 }
 0x4ef   :  { %v626_v40 = vsub.s32 32, %v625_v37  ;;  %v630_v41 = vsub.s32 4294967266, %v625_v37  ;;  %v627_v42 = vshll.u32 %v618_v31, %v625_v37 }
 0x4f1   :  { %v628_v44 = vshrl.u32 %v610_v39, %v626_v40  ;;  %v631_v29 = vadd.s32 127, %v630_v41 }
 0x4f3   :  { %v629_v33 = vor.u32 %v628_v44, %v627_v42  ;;  %v632_v45 = vshll.u32 %v631_v29, 23 }
 0x4f5   :  { %v633_v46 = vor.u32 4788187, %v632_v45  ;;  %v636_v48 = vcvt.s32.f32 %v629_v33 }
 0x4f7   :  { %v634_v47 = vand.u32 2147483647, %v633_v46 }
 0x4f9   :  { %v637_v49 = vmul.f32 %v636_v48, %v634_v47 }
 0x4fb   :  { %v638_v51 = vxor.u32 2147483648, %v637_v49 }
 0x4fd   :  { %v639_v52 = vsel %vm556_vm10, %v638_v51, %v637_v49 }
 0x4fe   :  { %v642_v54 = vsel %vm555_vm11, %v1137_v38, %v639_v52 }
 0x4ff   :  { %899 = vcosq.f32 %v642_v54 }
 0x500   :  { %901 = vsinq.f32 %v642_v54 }
 0x509   :  { %v900_v61 = vpop.eup %899 }
 0x50a   :  { %v902_v0 = vpop.eup %901  ;;  %v653_v1 = vxor.u32 2147483648, %v900_v61 }
 0x50b   :  { %v650_v2 = vxor.u32 2147483648, %v902_v0 }
 0x50c   :  { %v654_v43 = vsel %vm652_vm12, %v653_v1, %v902_v0  ;;  %v759_v3 = vsel %vm757_vm13, %v653_v1, %v902_v0 }
 0x50d   :  { %v651_v4 = vsel %vm649_vm14, %v900_v61, %v650_v2  ;;  %v756_v58 = vsel %vm754_vm15, %v900_v61, %v650_v2 }
 0x50e   :  { %v655_v6 = vsel %vm648_vm0, %v651_v4, %v654_v43  ;;  %v760_v7 = vsel %vm753_vm1, %v756_v58, %v759_v3 }
 0x50f   :  { %v656_v59 = vsel %vm646_vm2, nan, %v655_v6  ;;  %v761_v16 = vsel %vm646_vm2, nan, %v760_v7 }
 0x510   :  { %657 = vst [vmem:[#allocation5] sm:$0x1] %v656_v59  ;;  %762 = vst [vmem:[#allocation5 + $0x1] sm:$0x1] %v761_v16 }
 0x511   :  { %926 = shalt.err (!%p923_p9)
}
 0x512   :  { %s927_s13 = scalar_lea.hbm %s1176_s6, 32 }
 0x513   :  { %p928_p10 = scmp.ne.s32.totalorder %s1176_s6, %s927_s13  ;;  %p931_p11 = scmp.lt.u32.totalorder %s927_s13, %s1176_s6 }
 0x515   :  { %p933_p12 = pnand %p931_p11, %p928_p10 }
 0x517   :  { %936 = shalt.err (!%p933_p12)
}
 0x518   :  { %772 = dma.vmem_to_hbm [thread:$0]  %s770_s10, 32, %s1176_s6, [#allocation3]  }
 0x519   :  { %939 = dma.done.wait [#allocation3], 32  }
 0x51a   :  { %940 = vsyncadd [#allocation3], 4294967264 }
 0x51b   :  { %776 = vsyncpa [#allocation3], 1 }
 0x51c   :  { %777 = vsyncpa [#allocation4], 1 }

</bundles_post_ra>
